<compile_context>
chip_gen: v6e
topology: v6e:2x2x1
jax: 0.10.0
libtpu: 0.0.40
codegen_flags: <defaults>
</compile_context>

<pallas_src>
import functools

import jax
import jax.numpy as jnp
from jax import lax
from jax.experimental import pallas as pl
from jax.experimental.pallas import tpu as pltpu


def _complex_conv_kernel(x_ref, wc_ref, bc_ref, out_ref, *, tap_offsets, win):
    """One batch element per grid step.

    x_ref  : (2*Cin, Lflat)            flattened padded image, [real Cin | imag Cin]
    wc_ref : (2*Cout, KH*KW*2*Cin)     block-complex weights, tap-major feature order
    bc_ref : (2*Cout, 1)               combined bias  [br - bi ; br + bi]
    out_ref: (2*Cout, win)             win = OH1*Wp  (stride-1 rows, Wp-wide, lane-dense)
    """
    # Build the "im2col" matrix in VMEM from static shifted views (no HBM traffic).
    cols = [x_ref[:, pl.ds(off, win)] for off in tap_offsets]
    xc = cols[0] if len(cols) == 1 else jnp.concatenate(cols, axis=0)  # (2K, win)

    # Single fused block-complex matmul on the MXU: rows [0:Cout) = rel, [Cout:2Cout) = img.
    y = jnp.dot(wc_ref[...], xc, preferred_element_type=jnp.float32)   # (2*Cout, win)
    out_ref[...] = (y + bc_ref[...]).astype(out_ref.dtype)


def complex_conv2d(x, wr, wi, br, bi, *, stride=1, padding=0):
    """x: (B, 2*Cin, H, W) NCHW; wr/wi: (Cout, Cin, KH, KW); br/bi: (Cout,)."""
    B, C2, H, W = x.shape
    Cin = C2 // 2
    Cout, _, KH, KW = wr.shape

    Hp, Wp = H + 2 * padding, W + 2 * padding
    OH1, OW1 = Hp - KH + 1, Wp - KW + 1                 # stride-1 output extent
    OH = (Hp - KH) // stride + 1
    OW = (Wp - KW) // stride + 1

    win = OH1 * Wp                                      # per-tap window (flattened rows)
    Lflat = Hp * Wp + (KW - 1)                          # keep every tap window in-bounds

    # Pad spatially, flatten H*W (free reshape); small zero tail for the last tap window.
    xp = jnp.pad(x, ((0, 0), (0, 0), (padding, padding), (padding, padding)))
    xflat = xp.reshape(B, C2, Hp * Wp).astype(jnp.float32)
    if Lflat > Hp * Wp:
        xflat = jnp.pad(xflat, ((0, 0), (0, 0), (0, Lflat - Hp * Wp)))

    # Block-complex weight: per tap (kh,kw) the 2Cin-wide column block is
    #   rel rows: [ Wr(kh,kw) | -Wi(kh,kw) ]
    #   img rows: [ Wi(kh,kw) |  Wr(kh,kw) ]
    wr_t = jnp.transpose(wr, (2, 3, 0, 1)).astype(jnp.float32)   # (KH, KW, Cout, Cin)
    wi_t = jnp.transpose(wi, (2, 3, 0, 1)).astype(jnp.float32)
    top = jnp.concatenate([wr_t, -wi_t], axis=-1)                # rel rows
    bot = jnp.concatenate([wi_t, wr_t], axis=-1)                 # img rows
    wc = jnp.concatenate([top, bot], axis=2)                     # (KH, KW, 2Cout, 2Cin)
    wc = wc.reshape(KH * KW, 2 * Cout, 2 * Cin)
    wc = jnp.transpose(wc, (1, 0, 2)).reshape(2 * Cout, KH * KW * 2 * Cin)

    bc = jnp.concatenate([br - bi, br + bi]).reshape(2 * Cout, 1).astype(jnp.float32)

    # Static tap offsets into the flattened (Hp*Wp) axis, row-major over (kh, kw).
    tap_offsets = tuple(kh * Wp + kw for kh in range(KH) for kw in range(KW))

    kernel = functools.partial(_complex_conv_kernel,
                               tap_offsets=tap_offsets, win=win)

    out_flat = pl.pallas_call(
        kernel,
        out_shape=jax.ShapeDtypeStruct((B, 2 * Cout, win), jnp.float32),
        grid_spec=pltpu.PrefetchScalarGridSpec(
            num_scalar_prefetch=0,
            grid=(B,),
            in_specs=[
                pl.BlockSpec((None, C2, Lflat), lambda b: (b, 0, 0)),
                pl.BlockSpec((2 * Cout, KH * KW * 2 * Cin), lambda b: (0, 0)),
                pl.BlockSpec((2 * Cout, 1), lambda b: (0, 0)),
            ],
            out_specs=pl.BlockSpec((None, 2 * Cout, win), lambda b: (b, 0, 0)),
        ),
        compiler_params=pltpu.CompilerParams(
            dimension_semantics=("parallel",)),
    )(xflat, wc, bc)

    # (B, 2Cout, OH1*Wp) -> (B, 2Cout, OH1, Wp): free reshape; then drop the KW-1 garbage
    # columns per row and apply the (possibly strided) subsampling. Channel-major layout
    # comes straight out of the kernel, so no NHWC->NCHW transpose is needed.
    out = out_flat.reshape(B, 2 * Cout, OH1, Wp)
    out = out[:, :, : (OH - 1) * stride + 1 : stride,
                    : (OW - 1) * stride + 1 : stride]
    return out


def _reference(x, wr, wi, br, bi, *, stride, padding):
    """Pure-JAX reference mirroring the PyTorch module (for correctness check)."""
    Cin = x.shape[1] // 2

    def conv(z, w, b):
        y = lax.conv_general_dilated(
            z, w, window_strides=(stride, stride),
            padding=((padding, padding), (padding, padding)),
            dimension_numbers=("NCHW", "OIHW", "NCHW"),
            precision=lax.Precision.HIGHEST)
        return y + b[None, :, None, None]

    real, imag = x[:, :Cin], x[:, Cin:]
    mi_ki = conv(imag, wi, bi)
    mi_kr = conv(imag, wr, br)
    mr_ki = conv(real, wi, bi)
    mr_kr = conv(real, wr, br)
    return jnp.concatenate([mr_kr - mi_ki, mr_ki + mi_kr], axis=1)


if __name__ == "__main__":
    # Module config: ComplexCnn2d(in_channels=4, out_channels=8, kernel_size=3,
    #                             stride=1, padding=1)
    in_channels, out_channels, ksize, stride, padding = 4, 8, 3, 1, 1
    B, H, W = 2, 16, 16

    key = jax.random.PRNGKey(0)
    kx, kwr, kwi, kbr, kbi = jax.random.split(key, 5)

    # Deterministic "PyTorch-like" init: uniform(-bound, bound), bound = 1/sqrt(fan_in)
    fan_in = in_channels * ksize * ksize
    bound = 1.0 / (fan_in ** 0.5)
    wr = jax.random.uniform(kwr, (out_channels, in_channels, ksize, ksize),
                            jnp.float32, -bound, bound)
    wi = jax.random.uniform(kwi, (out_channels, in_channels, ksize, ksize),
                            jnp.float32, -bound, bound)
    br = jax.random.uniform(kbr, (out_channels,), jnp.float32, -bound, bound)
    bi = jax.random.uniform(kbi, (out_channels,), jnp.float32, -bound, bound)

    x = jax.random.normal(kx, (B, 2 * in_channels, H, W), jnp.float32)

    out = complex_conv2d(x, wr, wi, br, bi, stride=stride, padding=padding)
    out = jax.block_until_ready(out)

    ref = _reference(x, wr, wi, br, bi, stride=stride, padding=padding)
    ref = jax.block_until_ready(ref)

    assert out.shape == (B, 2 * out_channels, H, W), out.shape
    max_err = float(jnp.max(jnp.abs(out - ref)))
    assert jnp.allclose(out, ref, atol=5e-4, rtol=5e-4), max_err

    print("KERNEL_OK")
</pallas_src>

<mosaic_0001>
module attributes {stable_mosaic.version = 11 : i64} {
  func.func @_complex_conv_kernel(%arg0: i32, %arg1: memref<1x8x326xf32, #tpu.memory_space<vmem>>, %arg2: memref<16x72xf32, #tpu.memory_space<vmem>>, %arg3: memref<16x1xf32, #tpu.memory_space<vmem>>, %arg4: memref<1x16x288xf32, #tpu.memory_space<vmem>>) attributes {dimension_semantics = [#tpu.dimension_semantics<parallel>], iteration_bounds = array<i64: 2>, scalar_prefetch = 0 : i64, scratch_operands = 0 : i64, tpu.core_type = #tpu.core_type<tc>, window_params = [{transform_indices = @transform_0, window_bounds = array<i64: 1, 8, 326>}, {pipeline_mode = #tpu.pipeline_mode<synchronous>, transform_indices = @transform_1, window_bounds = array<i64: 16, 72>}, {pipeline_mode = #tpu.pipeline_mode<synchronous>, transform_indices = @transform_2, window_bounds = array<i64: 16, 1>}, {transform_indices = @transform_3, window_bounds = array<i64: 1, 16, 288>}]} {
    %c0 = arith.constant 0 : index
    %c0_0 = arith.constant 0 : index
    %c0_1 = arith.constant 0 : index
    %0 = vector.load %arg1[%c0, %c0_0, %c0_1] : memref<1x8x326xf32, #tpu.memory_space<vmem>>, vector<1x8x288xf32>
    %1 = vector.shape_cast %0 : vector<1x8x288xf32> to vector<8x288xf32>
    %c0_2 = arith.constant 0 : index
    %c0_3 = arith.constant 0 : index
    %c1 = arith.constant 1 : index
    %2 = vector.load %arg1[%c0_2, %c0_3, %c1] : memref<1x8x326xf32, #tpu.memory_space<vmem>>, vector<1x8x288xf32>
    %3 = vector.shape_cast %2 : vector<1x8x288xf32> to vector<8x288xf32>
    %c0_4 = arith.constant 0 : index
    %c0_5 = arith.constant 0 : index
    %c2 = arith.constant 2 : index
    %4 = vector.load %arg1[%c0_4, %c0_5, %c2] : memref<1x8x326xf32, #tpu.memory_space<vmem>>, vector<1x8x288xf32>
    %5 = vector.shape_cast %4 : vector<1x8x288xf32> to vector<8x288xf32>
    %c0_6 = arith.constant 0 : index
    %c0_7 = arith.constant 0 : index
    %c18 = arith.constant 18 : index
    %6 = vector.load %arg1[%c0_6, %c0_7, %c18] : memref<1x8x326xf32, #tpu.memory_space<vmem>>, vector<1x8x288xf32>
    %7 = vector.shape_cast %6 : vector<1x8x288xf32> to vector<8x288xf32>
    %c0_8 = arith.constant 0 : index
    %c0_9 = arith.constant 0 : index
    %c19 = arith.constant 19 : index
    %8 = vector.load %arg1[%c0_8, %c0_9, %c19] : memref<1x8x326xf32, #tpu.memory_space<vmem>>, vector<1x8x288xf32>
    %9 = vector.shape_cast %8 : vector<1x8x288xf32> to vector<8x288xf32>
    %c0_10 = arith.constant 0 : index
    %c0_11 = arith.constant 0 : index
    %c20 = arith.constant 20 : index
    %10 = vector.load %arg1[%c0_10, %c0_11, %c20] : memref<1x8x326xf32, #tpu.memory_space<vmem>>, vector<1x8x288xf32>
    %11 = vector.shape_cast %10 : vector<1x8x288xf32> to vector<8x288xf32>
    %c0_12 = arith.constant 0 : index
    %c0_13 = arith.constant 0 : index
    %c36 = arith.constant 36 : index
    %12 = vector.load %arg1[%c0_12, %c0_13, %c36] : memref<1x8x326xf32, #tpu.memory_space<vmem>>, vector<1x8x288xf32>
    %13 = vector.shape_cast %12 : vector<1x8x288xf32> to vector<8x288xf32>
    %c0_14 = arith.constant 0 : index
    %c0_15 = arith.constant 0 : index
    %c37 = arith.constant 37 : index
    %14 = vector.load %arg1[%c0_14, %c0_15, %c37] : memref<1x8x326xf32, #tpu.memory_space<vmem>>, vector<1x8x288xf32>
    %15 = vector.shape_cast %14 : vector<1x8x288xf32> to vector<8x288xf32>
    %c0_16 = arith.constant 0 : index
    %c0_17 = arith.constant 0 : index
    %c38 = arith.constant 38 : index
    %16 = vector.load %arg1[%c0_16, %c0_17, %c38] : memref<1x8x326xf32, #tpu.memory_space<vmem>>, vector<1x8x288xf32>
    %17 = vector.shape_cast %16 : vector<1x8x288xf32> to vector<8x288xf32>
    %18 = tpu.concatenate %1, %3, %5, %7, %9, %11, %13, %15, %17 in 0 : vector<8x288xf32>, vector<8x288xf32>, vector<8x288xf32>, vector<8x288xf32>, vector<8x288xf32>, vector<8x288xf32>, vector<8x288xf32>, vector<8x288xf32>, vector<8x288xf32> -> vector<72x288xf32>
    %c0_18 = arith.constant 0 : index
    %c0_19 = arith.constant 0 : index
    %19 = vector.load %arg2[%c0_18, %c0_19] : memref<16x72xf32, #tpu.memory_space<vmem>>, vector<16x72xf32>
    %cst = arith.constant dense<0.000000e+00> : vector<16x288xf32>
    %20 = tpu.matmul %19, %18, %cst {dimension_numbers = #tpu.dot_dimension_numbers<[1], [0], [0], [1], [0, 0, 1, 1], [], []>} : vector<16x72xf32>, vector<72x288xf32>, vector<16x288xf32> -> vector<16x288xf32>
    %c0_20 = arith.constant 0 : index
    %c0_21 = arith.constant 0 : index
    %21 = vector.load %arg3[%c0_20, %c0_21] : memref<16x1xf32, #tpu.memory_space<vmem>>, vector<16x1xf32>
    %22 = vector.broadcast %21 : vector<16x1xf32> to vector<16x288xf32>
    %23 = arith.addf %20, %22 : vector<16x288xf32>
    %c0_22 = arith.constant 0 : index
    %c0_23 = arith.constant 0 : index
    %c0_24 = arith.constant 0 : index
    %24 = vector.load %arg4[%c0_22, %c0_23, %c0_24] : memref<1x16x288xf32, #tpu.memory_space<vmem>>, vector<1x16x288xf32>
    %25 = vector.shape_cast %24 : vector<1x16x288xf32> to vector<16x288xf32>
    %26 = vector.shape_cast %23 : vector<16x288xf32> to vector<1x16x288xf32>
    tpu.vector_store %arg4[%c0_22, %c0_23, %c0_24], %26 {strides = array<i32>} : memref<1x16x288xf32, #tpu.memory_space<vmem>>, vector<1x16x288xf32>,
    return
  }
  func.func @transform_0(%arg0: i32) -> (i32, i32, i32) {
    %c0_i32 = arith.constant 0 : i32
    %c0_i32_0 = arith.constant 0 : i32
    %c0_i32_1 = arith.constant 0 : i32
    return %arg0, %c0_i32, %c0_i32_0 : i32, i32, i32
  }
  func.func @transform_1(%arg0: i32) -> (i32, i32) {
    %c0_i32 = arith.constant 0 : i32
    %c0_i32_0 = arith.constant 0 : i32
    %c0_i32_1 = arith.constant 0 : i32
    return %c0_i32, %c0_i32_0 : i32, i32
  }
  func.func @transform_2(%arg0: i32) -> (i32, i32) {
    %c0_i32 = arith.constant 0 : i32
    %c0_i32_0 = arith.constant 0 : i32
    %c0_i32_1 = arith.constant 0 : i32
    return %c0_i32, %c0_i32_0 : i32, i32
  }
  func.func @transform_3(%arg0: i32) -> (i32, i32, i32) {
    %c0_i32 = arith.constant 0 : i32
    %c0_i32_0 = arith.constant 0 : i32
    %c0_i32_1 = arith.constant 0 : i32
    return %arg0, %c0_i32, %c0_i32_0 : i32, i32, i32
  }
}

</mosaic_0001>

<bundles_post_ra>
// kernel: tpu_custom_call.1
= control target key start
LH: loop header
LB: loop body
LE: loop exit
PB: predicated region body
PF: predicated region fallthrough
CT: control target
= control target key end

     0   :  { %8 = vsyncpa [#allocation3], 0  ;;  %s993_s0 = inlined_call_operand.hbm [shape: f32[2,8,326], index: 0, kind: input, shape index: {}]   ;;  %s994_s1 = inlined_call_operand.vmem [shape: f32[16,72], index: 1, kind: input, shape index: {}]   ;;  %s995_s2 = inlined_call_operand.vmem [shape: f32[16,1], index: 2, kind: input, shape index: {}]   ;;  %s996_s3 = inlined_call_operand.hbm [shape: f32[2,16,288], index: 3, kind: output, shape index: {}]  }
   0x1   :  { %10 = vsyncpa [#allocation3 + $0x1], 0 }
   0x2   :  { %11 = vsyncpa [#allocation4], 0 }
   0x3   :  { %13 = vsyncpa [#allocation4 + $0x1], 0  ;;  %s793_s12 = smov 0   ;;  %s795_s13 = smov 0  }
   0x4   :  { %s797_s14 = smov 0   ;;  %s799_s15 = smov 0  }
   0x5 LB: > { %s814_s16 = sadd.s32 4294967295, %s757_s15   ;;  %s556_s17 = sadd.s32 4294967294, %s757_s15   ;;  %s757_s15 = sphi %s799_s15, %s1012_s15   ;;  %s753_s14 = sphi %s797_s14, %s1011_s14   ;;  %s749_s13 = sphi %s795_s13, %s1010_s13   ;;  %s745_s12 = sphi %s793_s12, %s1009_s12  }
   0x6   : > { %s818_s18 = sadd.s32 1, %s757_s15   ;;  %s26_s19 = sadd.s32 1, %s753_s14 }
   0x7   : > { %s23_s20 = ssub.s32 %s757_s15, %s818_s18  ;;  %p33_p0 = scmp.ne.s32.totalorder %s753_s14, %s749_s13 }
   0x8   : > { %p24_p1 = scmp.eq.s32.totalorder %s23_s20, 0  ;;  %p34_p2 = scmp.eq.s32.totalorder %s757_s15, 0 }
   0x9   : > { %p39_p3 = scmp.ne.s32.totalorder %s749_s13, %s745_s12  ;;  %p40_p4 = scmp.eq.s32.totalorder %s814_s16, 0 }
   0xa   : > { %s830_s21 = scalar_select %p24_p1, %s753_s14, %s26_s19  }
   0xb   : > { %p35_p5 = por %p34_p2, %p33_p0  ;;  %p832_p6 = por %p40_p4, %p39_p3 }
   0xc   : > { %p105_p7 = scmp.eq.s32.totalorder %s814_s16, 1  ;;  %p111_p8 = scmp.eq.s32.totalorder %s556_s17, 1 }
   0xd   : > { %s999_s22 = scalar_select %p832_p6, 1, 0 }
   0xe   : > { %p617_p10 = scmp.lt.s32.totalorder %s757_s15, 2  ;;  %p839_p11 = por %p105_p7, %p33_p0 }
   0xf   : > { %p843_p12 = por %p111_p8, %p39_p3  ;;  %s137_s25 = sand.u32 1, %s753_s14  }
  0x10   : > { %s1000_s23 = scalar_select %p839_p11, 1, 0 }
  0x11   : > { %s1001_s24 = scalar_select %p843_p12, 1, 0 }
  0x12   : > { %s601_s26 = smul.u32 384, %s757_s15  ;;  %p854_p13 = pnand %p617_p10, %p35_p5 }
  0x13   : > { %s600_s27 = smul.u32 24, %s137_s25  ;;  %s138_s7 = scalar_lea.sflag [#allocation3], %s137_s25 }
  0x14   : > { %s852_s30 = scalar_lea.hbm %s993_s0, %s601_s26  ;;  %p667_p3 = pneg %p854_p13 }
  0x15   : > { %s141_s5 = scalar_lea.vmem [#allocation2], %s600_s27  ;;  %s665_s8 = scalar_lea.hbm %s852_s30, 384 }
  0x16   : > { %s149_s6 = sshll.u32 %s141_s5, 4  ;;  %p666_p2 = scmp.ne.s32.totalorder %s852_s30, %s665_s8  ;;  %s150_s6 = int_to_ptr.vmem [resolvable:$true] %s149_s6 }
  0x17   : > { %s670_s11 = scalar_lea.hbm %s993_s0, 768  ;;  %p671_p5 = scmp.lt.s32.totalorder %s852_s30, %s993_s0 }
  0x18   : > { %p668_p4 = pnand %p667_p3, %p666_p2  ;;  %p672_p8 = scmp.lt.s32.totalorder %s670_s11, %s665_s8 }
  0x1a   : > { %p669_p7 = pneg %p668_p4  ;;  %p673_p10 = por %p672_p8, %p671_p5 }
  0x1c   : > { %p674_p9 = pnand %p673_p10, %p669_p7 }
  0x1e   : > { %677 = shalt.err (!%p674_p9)
}
  0x1f   : > { %s678_s20 = scalar_lea.vmem %s150_s6, 384  ;;  %s759_s25 = smov [#allocation2]  }
  0x20   : > { %p679_p0 = scmp.ne.s32.totalorder %s150_s6, %s678_s20  ;;  %s683_s26 = sshll.u32 %s759_s25, 4  ;;  %s684_s26 = int_to_ptr.vmem [resolvable:$false] %s683_s26 }
  0x21   : > { %s685_s27 = scalar_lea.vmem %s684_s26, 768  ;;  %p686_p2 = scmp.lt.s32.totalorder %s150_s6, %s684_s26 }
  0x22   : > { %p681_p1 = pnand %p679_p0, %p667_p3  ;;  %p687_p4 = scmp.lt.s32.totalorder %s685_s27, %s678_s20 }
  0x24   : > { %p682_p12 = pneg %p681_p1  ;;  %p688_p11 = por %p687_p4, %p686_p2 }
  0x26   : > { %p689_p6 = pnand %p688_p11, %p682_p12 }
  0x28   : > { %692 = shalt.err (!%p689_p6)
}
  0x29   : > { %612 = dma.hbm_to_vmem [thread:$0]  (!%p854_p13), %s852_s30, 384, %s150_s6, %s138_s7  }
  0x2a   : > { %p1003_p9 = scmp.lt.s32.totalorder %s757_s15, 3  ;;  %p1004_p7 = scmp.ge.s32.totalorder %s757_s15, 1 }
  0x2c   : > { %p155_p5 = pnand %p1004_p7, %p1003_p9 }
  0x2d   : > { %s879_s28 = sand.u32 (!%p155_p5), 1, %s749_s13   ;;  %p1005_p6 = scmp.ne.s32.totalorder (!%p155_p5), %s999_s22, 0 }
  0x2e   : > { %158 = sbr.rel (%p155_p5) target bundleno = 432 (0x1b0), region = 32  ;;  %s161_s5 = scalar_lea.sflag (!%p155_p5), [#allocation3], %s879_s28 }
  0x2f   : > { %s602_s29 = smul.u32 (!%p155_p5), 24, %s879_s28 }
  0x31   : > { %s164_s8 = scalar_lea.vmem (!%p155_p5), [#allocation2], %s602_s29 }
  0x33   : > { %736 = dma.done.wait (%p1005_p6), %s161_s5, 384  }
  0x34   : > { %738 = vsyncadd (%p1005_p6), %s161_s5, 4294966912  ;;  %v887_v0 = vld [vmem:[%s164_s8 + $0x8] sm:$0xff]  ;;  %v889_v1 = vld [vmem:[%s164_s8] sm:$0xff]  ;;  %s760_s30 = smov 90   ;;  %s761_s4 = smov 91   ;;  %v766_v3 = vmov 0.0  }
  0x35   : > { %279 = vrot.lane.b32.xlu0 %v887_v0, %s760_s30  ;;  %277 = vrot.lane.b32.xlu1 %v889_v1, %s760_s30  ;;  %v893_v2 = vld [vmem:[%s164_s8 + $0x10] sm:$0xff]  ;;  %s762_s22 = smov 92   ;;  %s763_s6 = smov 108   ;;  %v915_v4 = vld [vmem:[%s994_s1] sm:$0xff]  ;;  %vm303_vm0 = vcmask 588800   ;;  %v769_v5 = vmov 0  }
  0x36   : > { %s764_s7 = smov 109   ;;  %s765_s9 = smov 110   ;;  %374 = vmatprep.mubr.f32.mxu0 %v766_v3  ;;  %597 = vmatprep.mubr.msk.f32.mxu1 %vm303_vm0, %v915_v4  ;;  %v291_v6 = vld [vmem:[%s995_s2] sm:$0xff]  ;;  %v292_v7 = vld [vmem:[%s995_s2 + $0x8] sm:$0xff]  ;;  %vm283_vm1 = vcmask 736256   ;;  %vm271_vm2 = vcmask 744448  }
  0x37   : > { %s767_s17 = smov 126   ;;  %s768_s19 = smov 127   ;;  %663 = vset.pattern.permute.xlu0 %v769_v5  ;;  %664 = vset.pattern.permute.xlu1 %v769_v5  ;;  %vm259_vm3 = vcmask 752640   ;;  %vm247_vm4 = vcmask 883712   ;;  %vm235_vm5 = vcmask 891904   ;;  %vm223_vm6 = vcmask 900096  }
  0x38   : > { %vm211_vm7 = vcmask 1031168   ;;  %vm199_vm8 = vcmask 1039360   ;;  %v290_v48 = vld [vmem:[%s994_s1 + $0x8] sm:$0xff]  ;;  %s603_s8 = smul.u32 48, %s879_s28  ;;  %vm464_vm9 = vcmask 261120   ;;  %p1006_p12 = scmp.ne.s32.totalorder %s1000_s23, 0 }
  0x39   : > { %281 = vrot.lane.b32.xlu0 %v893_v2, %s760_s30  ;;  %267 = vrot.lane.b32.xlu1 %v887_v0, %s761_s4  ;;  %s770_s11 = smov [#allocation5]  }
  0x3a   : > { %s186_s30 = scalar_lea.vmem [#allocation5], %s603_s8 }
  0x3d   : > { %269 = vrot.lane.b32.xlu0 %v893_v2, %s761_s4  ;;  %265 = vrot.lane.b32.xlu1 %v889_v1, %s761_s4  ;;  %s483_s4 = sshll.u32 %s186_s30, 4  ;;  %s945_s4 = int_to_ptr.vmem [resolvable:$true] %s483_s4 }
  0x3e   : > { %s693_s10 = scalar_lea.vmem %s945_s4, 768 }
  0x3f   : > { %p694_p11 = scmp.ne.s32.totalorder %s945_s4, %s693_s10 }
  0x41   : > { %255 = vrot.lane.b32.xlu0 %v887_v0, %s762_s22  ;;  %257 = vrot.lane.b32.xlu1 %v893_v2, %s762_s22  ;;  %p695_p13 = pnand %p694_p11, %p1006_p12 }
  0x43   : > { %p696_p0 = pneg %p695_p13 }
  0x45   : > { %253 = vrot.lane.b32.xlu0 %v889_v1, %s762_s22  ;;  %243 = vrot.lane.b32.xlu1 %v887_v0, %s763_s6  ;;  %s604_s22 = smul.u32 768, %s814_s16  ;;  %s470_s16 = scalar_lea.sflag [#allocation4], %s879_s28 }
  0x49   : > { %245 = vrot.lane.b32.xlu0 %v893_v2, %s763_s6  ;;  %241 = vrot.lane.b32.xlu1 %v889_v1, %s763_s6 }
  0x4d   : > { %231 = vrot.lane.b32.xlu0 %v887_v0, %s764_s7  ;;  %233 = vrot.lane.b32.xlu1 %v893_v2, %s764_s7 }
  0x51   : > { %229 = vrot.lane.b32.xlu0 %v889_v1, %s764_s7  ;;  %219 = vrot.lane.b32.xlu1 %v887_v0, %s765_s9 }
  0x55   : > { %221 = vrot.lane.b32.xlu0 %v893_v2, %s765_s9  ;;  %217 = vrot.lane.b32.xlu1 %v889_v1, %s765_s9  ;;  %s950_s9 = scalar_lea.hbm %s996_s3, %s604_s22 }
  0x59   : > { %207 = vrot.lane.b32.xlu0 %v887_v0, %s767_s17  ;;  %209 = vrot.lane.b32.xlu1 %v893_v2, %s767_s17 }
  0x5d   : > { %205 = vrot.lane.b32.xlu0 %v889_v1, %s767_s17  ;;  %195 = vrot.lane.b32.xlu1 %v887_v0, %s768_s19  ;;  %s697_s17 = sshll.u32 %s770_s11, 4  ;;  %s698_s17 = int_to_ptr.vmem [resolvable:$false] %s697_s17 }
  0x5e   : > { %p700_p1 = scmp.lt.s32.totalorder %s945_s4, %s698_s17 }
  0x61   : > { %197 = vrot.lane.b32.xlu0 %v893_v2, %s768_s19  ;;  %193 = vrot.lane.b32.xlu1 %v889_v1, %s768_s19  ;;  %s699_s19 = scalar_lea.vmem %s698_s17, 1536 }
  0x62   : > { %p701_p3 = scmp.lt.s32.totalorder %s699_s19, %s693_s10 }
  0x64   : > { %p702_p8 = por %p701_p3, %p700_p1 }
  0x65   : > { %295 = vperm.xlu0 %663, %v291_v6   ;;  %300 = vperm.xlu1 %664, %v292_v7  }
  0x66   : > { %p703_p10 = pnand %p702_p8, %p696_p0 }
  0xa7   : > { %v280_v8 = vpop.permute.xlu0 %279  ;;  %v278_v9 = vpop.permute.xlu1 %277 }
  0xa8   : > { %v284_v13 = vsel %vm283_vm1, %v278_v9, %v280_v8 }
  0xab   : > { %v282_v10 = vpop.permute.xlu0 %281  ;;  %v268_v11 = vpop.permute.xlu1 %267 }
  0xac   : > { %579 = vmatprep.subr.mxu1 %v282_v10  ;;  %v285_v12 = vsel %vm283_vm1, %v280_v8, %v282_v10 }
  0xad   : > { %324 = vmatprep.subr.mxu0 %v285_v12  ;;  %580 = vmatpush3.msra.mxu1 %v282_v10 }
  0xae   : > { %325 = vmatpush1.msra.mxu0 %v284_v13 }
  0xaf   : > { %v270_v14 = vpop.permute.xlu0 %269  ;;  %v266_v15 = vpop.permute.xlu1 %265 }
  0xb0   : > { %581 = vmatprep.subr.mxu1 %v270_v14  ;;  %v273_v16 = vsel %vm271_vm2, %v268_v11, %v270_v14  ;;  %v272_v17 = vsel %vm271_vm2, %v266_v15, %v268_v11 }
  0xb1   : > { %326 = vmatprep.subr.mxu0 %v273_v16  ;;  %582 = vmatpush3.msra.mxu1 %v270_v14 }
  0xb2   : > { %327 = vmatpush1.msra.mxu0 %v272_v17 }
  0xb3   : > { %v256_v18 = vpop.permute.xlu0 %255  ;;  %v258_v19 = vpop.permute.xlu1 %257 }
  0xb4   : > { %583 = vmatprep.subr.mxu1 %v258_v19  ;;  %v261_v20 = vsel %vm259_vm3, %v256_v18, %v258_v19 }
  0xb5   : > { %328 = vmatprep.subr.mxu0 %v261_v20  ;;  %584 = vmatpush3.msra.mxu1 %v258_v19 }
  0xb7   : > { %v254_v21 = vpop.permute.xlu0 %253  ;;  %v244_v22 = vpop.permute.xlu1 %243 }
  0xb8   : > { %v260_v23 = vsel %vm259_vm3, %v254_v21, %v256_v18 }
  0xb9   : > { %329 = vmatpush1.msra.mxu0 %v260_v23 }
  0xbb   : > { %v246_v24 = vpop.permute.xlu0 %245  ;;  %v242_v25 = vpop.permute.xlu1 %241 }
  0xbc   : > { %585 = vmatprep.subr.mxu1 %v246_v24  ;;  %v249_v26 = vsel %vm247_vm4, %v244_v22, %v246_v24  ;;  %v248_v27 = vsel %vm247_vm4, %v242_v25, %v244_v22 }
  0xbd   : > { %330 = vmatprep.subr.mxu0 %v249_v26  ;;  %586 = vmatpush3.msra.mxu1 %v246_v24 }
  0xbe   : > { %331 = vmatpush1.msra.mxu0 %v248_v27 }
  0xbf   : > { %v232_v28 = vpop.permute.xlu0 %231  ;;  %v234_v29 = vpop.permute.xlu1 %233 }
  0xc0   : > { %587 = vmatprep.subr.mxu1 %v234_v29  ;;  %v237_v30 = vsel %vm235_vm5, %v232_v28, %v234_v29 }
  0xc1   : > { %332 = vmatprep.subr.mxu0 %v237_v30  ;;  %588 = vmatpush3.msra.mxu1 %v234_v29 }
  0xc3   : > { %v230_v31 = vpop.permute.xlu0 %229  ;;  %v220_v32 = vpop.permute.xlu1 %219 }
  0xc4   : > { %v236_v33 = vsel %vm235_vm5, %v230_v31, %v232_v28 }
  0xc5   : > { %333 = vmatpush1.msra.mxu0 %v236_v33 }
  0xc7   : > { %v222_v34 = vpop.permute.xlu0 %221  ;;  %v218_v35 = vpop.permute.xlu1 %217 }
  0xc8   : > { %589 = vmatprep.subr.mxu1 %v222_v34  ;;  %v225_v36 = vsel %vm223_vm6, %v220_v32, %v222_v34  ;;  %v224_v37 = vsel %vm223_vm6, %v218_v35, %v220_v32 }
  0xc9   : > { %334 = vmatprep.subr.mxu0 %v225_v36  ;;  %590 = vmatpush3.msra.mxu1 %v222_v34 }
  0xca   : > { %335 = vmatpush1.msra.mxu0 %v224_v37 }
  0xcb   : > { %v208_v38 = vpop.permute.xlu0 %207  ;;  %v210_v39 = vpop.permute.xlu1 %209 }
  0xcc   : > { %591 = vmatprep.subr.mxu1 %v210_v39  ;;  %v213_v40 = vsel %vm211_vm7, %v208_v38, %v210_v39 }
  0xcd   : > { %336 = vmatprep.subr.mxu0 %v213_v40  ;;  %592 = vmatpush3.msra.mxu1 %v210_v39 }
  0xcf   : > { %v206_v41 = vpop.permute.xlu0 %205  ;;  %v196_v42 = vpop.permute.xlu1 %195 }
  0xd0   : > { %v212_v43 = vsel %vm211_vm7, %v206_v41, %v208_v38 }
  0xd1   : > { %337 = vmatpush1.msra.mxu0 %v212_v43 }
  0xd3   : > { %v198_v44 = vpop.permute.xlu0 %197  ;;  %v194_v45 = vpop.permute.xlu1 %193 }
  0xd4   : > { %593 = vmatprep.subr.mxu1 %v198_v44  ;;  %v201_v46 = vsel %vm199_vm8, %v196_v42, %v198_v44  ;;  %v200_v47 = vsel %vm199_vm8, %v194_v45, %v196_v42 }
  0xd5   : > { %338 = vmatprep.subr.mxu0 %v201_v46  ;;  %594 = vmatpush3.msra.mxu1 %v198_v44 }
  0xd6   : > { %339 = vmatpush1.msra.mxu0 %v200_v47  ;;  %595 = vmatprep.subr.mxu1 %v893_v2 }
  0xd7   : > { %340 = vmatprep.subr.mxu0 %v887_v0  ;;  %596 = vmatpush3.msra.mxu1 %v893_v2 }
  0xd8   : > { %341 = vmatpush1.msra.mxu0 %v889_v1  ;;  %598 = vmatmul.mubr.msk.f32.vlgmr.msra.gmra.mxu1 %vm303_vm0, %v290_v48 }
  0xd9   : > { %561 = vmatmul.mubr.msk.f32.vlgmr.msra.gmra.mxu0 %vm303_vm0, %v915_v4 }
  0xda   : > { %380 = vmatprep.mubr.f32.mxu0 %v766_v3 }
  0xdd   : > { %562 = vmatmul.mubr.msk.f32.gmra.mxu0 %vm303_vm0, %v290_v48 }
  0xe0   : > { %v301_v49 = vpop.permute.xlu1 %300  ;;  %v296_v50 = vpop.permute.xlu0 %295 }
 0x198   : > { %v599_v51 = vpop.f32.mrf.mxu1 }
 0x199   : > { %v376_v52 = vpop.f32.mrf.mxu0  ;;  %v459_v53 = vadd.f32 %v599_v51, %v301_v49 }
 0x19a   : > { %v377_v54 = vadd.f32 %v376_v52, %v296_v50  ;;  %v453_v55 = vpop.f32.mrf.mxu1 }
 0x19b   : > { %v378_v56 = vpop.f32.mrf.mxu0  ;;  %v454_v57 = vadd.f32 %v453_v55, %v296_v50  ;;  %468 = vst.msk [vmem:[%s186_s30 + $0x28] sm:$0xff] %vm464_vm9, %v459_v53 }
 0x19c   : > { %462 = vst [vmem:[%s186_s30] sm:$0xff] %v377_v54  ;;  %v379_v58 = vadd.f32 %v378_v56, %v296_v50 }
 0x19d   : > { %v382_v59 = vpop.f32.mrf.mxu0  ;;  %465 = vst.msk [vmem:[%s186_s30 + $0x10] sm:$0xff] %vm464_vm9, %v454_v57 }
 0x19e   : > { %463 = vst [vmem:[%s186_s30 + $0x8] sm:$0xff] %v379_v58  ;;  %v383_v60 = vadd.f32 %v382_v59, %v301_v49 }
 0x19f   : > { %v384_v61 = vpop.f32.mrf.mxu0 }
 0x1a0   : > { %466 = vst [vmem:[%s186_s30 + $0x18] sm:$0xff] %v383_v60  ;;  %v385_v62 = vadd.f32 %v384_v61, %v301_v49 }
 0x1a2   : > { %467 = vst [vmem:[%s186_s30 + $0x20] sm:$0xff] %v385_v62 }
 0x1a3   : > { %706 = shalt.err (!%p703_p10)
}
 0x1a4   : > { %s707_s20 = scalar_lea.hbm %s950_s9, 768  ;;  %s711_s27 = scalar_lea.hbm %s996_s3, 1536 }
 0x1a5   : > { %p708_p2 = scmp.ne.s32.totalorder %s950_s9, %s707_s20  ;;  %p712_p7 = scmp.lt.s32.totalorder %s950_s9, %s996_s3 }
 0x1a6   : > { %p713_p5 = scmp.lt.s32.totalorder %s711_s27, %s707_s20 }
 0x1a7   : > { %p709_p4 = pnand %p708_p2, %p1006_p12 }
 0x1a8   : > { %p714_p6 = por %p713_p5, %p712_p7 }
 0x1a9   : > { %p710_p9 = pneg %p709_p4 }
 0x1ab   : > { %p715_p11 = pnand %p714_p6, %p710_p9 }
 0x1ad   : > { %718 = shalt.err (!%p715_p11)
}
 0x1ae   : > { %s771_s8 = smov 384   ;;  %s772_s30 = smov 24  }
 0x1af   : > { %607 = dma.vmem_to_hbm [thread:$0]  (%p1006_p12), %s945_s4, 768, %s950_s9, %s470_s16, %s771_s8, %s771_s8, %s772_s30  }
 0x1b0 PF: > { %s498_s22 = sand.u32 1, %s745_s12   ;;  %p1007_p13 = scmp.ne.s32.totalorder %s1001_s24, 0 }
 0x1b1   : > { %p1008_p0 = scmp.ge.s32.totalorder %s757_s15, 2  ;;  %s499_s6 = scalar_lea.sflag [#allocation4], %s498_s22 }
 0x1b3   : > { %p614_p1 = pnand %p1008_p0, %p1007_p13 }
 0x1b5   : > { %p615_p3 = pneg %p614_p1 }
 0x1b7   : > { %740 = dma.done.wait (%p615_p3), %s499_s6, 768  }
 0x1b8   : > { %742 = vsyncadd (%p615_p3), %s499_s6, 4294966528  ;;  %p16_p8 = scmp.ge.s32.totalorder %s818_s18, 4   ;;  %s1009_s12 = smov %s749_s13 }
 0x1b9   : > { %s1010_s13 = smov %s753_s14  ;;  %s1011_s14 = smov %s830_s21 }
 0x1ba   : > { %s1012_s15 = smov %s818_s18  ;;  %18 = sbr.rel (!%p16_p8) target bundleno = 5 (0x5), region = 77 }
 0x1bf   :  { %504 = vsyncpa [#allocation3], 1 }
 0x1c0   :  { %506 = vsyncpa [#allocation3 + $0x1], 1 }
 0x1c1   :  { %507 = vsyncpa [#allocation4], 1 }
 0x1c2   :  { %509 = vsyncpa [#allocation4 + $0x1], 1 }

</bundles_post_ra>
